<compile_context>
chip_gen: v7x
topology: tpu7x:2x2x1
jax: 0.10.0
libtpu: 0.0.40
codegen_flags: <defaults>
</compile_context>

<pallas_src>
import functools

import jax
import jax.numpy as jnp
from jax.experimental import pallas as pl
from jax.experimental.pallas import tpu as pltpu

BETA = 0.25  # commitment-loss weight used by the standard VQGAN Codebook


def _vq_fused_kernel(x_ref, we_ref, be_ref, cb_ref, cbt_ref, esq_ref,
                     wd_ref, bd_ref, dec_ref, idx_ref, ploss_ref,
                     *, distance_dtype):
    # --- Encoder: 1x1 conv == per-token linear projection  C -> D ---
    # x: (C, TN) tokens on lanes;  z: (D, TN)
    x = x_ref[...].astype(jnp.float32)
    z = jnp.dot(we_ref[...], x, preferred_element_type=jnp.float32)
    z = z + be_ref[...]                                                  # (D, TN)

    # --- Codebook: nearest-neighbour vector quantization ---
    # argmin_k ||z - e_k||^2 == argmin_k (||e_k||^2 - 2 e_k.z); ||z||^2 dropped.
    cross = jnp.dot(cb_ref[...].astype(distance_dtype),
                    z.astype(distance_dtype),
                    preferred_element_type=jnp.float32)                  # (K, TN)
    d = esq_ref[...] - 2.0 * cross                                       # (K, TN)

    K = d.shape[0]
    min_d = jnp.min(d, axis=0, keepdims=True)                            # (1, TN)
    row = jax.lax.broadcasted_iota(jnp.int32, d.shape, 0)                # (K, TN)
    idx = jnp.min(jnp.where(d <= min_d, row, jnp.int32(K)),
                  axis=0, keepdims=True)                                 # (1, TN) first argmin
    idx_ref[...] = idx                                                   # lane-dense store

    one_hot = (row == idx).astype(jnp.float32)                           # (K, TN)
    z_q = jnp.dot(cbt_ref[...], one_hot,
                  preferred_element_type=jnp.float32)                    # (D, TN) exact cb rows

    # q_loss = mean((sg(z_q)-z)^2) + beta*mean((z_q-sg(z))^2)
    # forward value == (1+beta) * mean((z_q - z)^2); emit per-token partial sums
    # (lane-dense) so the grid axis stays stateless/"parallel"; reduce in wrapper.
    diff = z_q - z
    ploss_ref[...] = jnp.sum(diff * diff, axis=0, keepdims=True)         # (1, TN)

    # Straight-through estimator: forward value is exactly z_q.
    # --- Decoder: 1x1 conv == per-token linear projection  D -> C ---
    dec = jnp.dot(wd_ref[...], z_q, preferred_element_type=jnp.float32)  # (C, TN)
    dec = dec + bd_ref[...]
    dec_ref[...] = dec.astype(dec_ref.dtype)


def _round_up(n, m):
    return ((n + m - 1) // m) * m


def vq_augmentation_forward(x_nchw, params, *, tile_n=1024,
                            distance_dtype=jnp.float32):
    B, C, H, W = x_nchw.shape
    D = params["w_enc"].shape[1]
    N = B * H * W

    # Pick a lane tile (multiple of 128) and pad the token axis so the grid divides it.
    tile_n = max(128, min(_round_up(tile_n, 128), _round_up(N, 128)))
    n_pad = _round_up(N, tile_n)

    # NCHW -> (C, N): channels on sublanes, tokens (b, h, w) on lanes.
    x_cn = jnp.transpose(x_nchw, (1, 0, 2, 3)).reshape(C, N)
    if n_pad != N:
        x_cn = jnp.pad(x_cn, ((0, 0), (0, n_pad - N)))

    # Pre-transpose weights so every in-kernel matmul is a plain lhs@rhs and hoist
    # the loop-invariant codebook norms out of the kernel.
    we_t = params["w_enc"].T                                             # (D, C)
    be_t = params["b_enc"].T                                             # (D, 1)
    cb = params["codebook"]                                              # (K, D)
    cb_t = cb.T                                                          # (D, K)
    e_sq = jnp.sum(cb * cb, axis=-1, keepdims=True)                      # (K, 1)
    wd_t = params["w_dec"].T                                             # (C, D)
    bd_t = params["b_dec"].T                                             # (C, 1)

    full = lambda i: (0, 0)
    kernel = functools.partial(_vq_fused_kernel, distance_dtype=distance_dtype)

    dec_cn, idx_row, ploss = pl.pallas_call(
        kernel,
        out_shape=(
            jax.ShapeDtypeStruct((C, n_pad), jnp.float32),   # decoded tokens (C, N_pad)
            jax.ShapeDtypeStruct((1, n_pad), jnp.int32),     # codebook indices
            jax.ShapeDtypeStruct((1, n_pad), jnp.float32),   # per-token loss partials
        ),
        grid_spec=pltpu.PrefetchScalarGridSpec(
            num_scalar_prefetch=0,
            grid=(n_pad // tile_n,),
            in_specs=[
                pl.BlockSpec((C, tile_n), lambda i: (0, i)),             # x tokens (tiled)
                pl.BlockSpec(we_t.shape, full),                          # encoder weight^T
                pl.BlockSpec(be_t.shape, full),                          # encoder bias
                pl.BlockSpec(cb.shape, full),                            # codebook (K, D)
                pl.BlockSpec(cb_t.shape, full),                          # codebook^T (D, K)
                pl.BlockSpec(e_sq.shape, full),                          # ||e_k||^2 (K, 1)
                pl.BlockSpec(wd_t.shape, full),                          # decoder weight^T
                pl.BlockSpec(bd_t.shape, full),                          # decoder bias
            ],
            out_specs=[
                pl.BlockSpec((C, tile_n), lambda i: (0, i)),             # decoded tokens
                pl.BlockSpec((1, tile_n), lambda i: (0, i)),             # indices (lane-dense)
                pl.BlockSpec((1, tile_n), lambda i: (0, i)),             # loss partials
            ],
        ),
        # No carried state -> the token axis is fully parallel (megacore on v7x).
        compiler_params=pltpu.CompilerParams(
            dimension_semantics=("parallel",)),
    )(x_cn, we_t, be_t, cb, cb_t, e_sq, wd_t, bd_t)

    # Drop padded tokens, restore layouts, reduce the loss.
    decoded = dec_cn[:, :N].reshape(C, B, H, W).transpose(1, 0, 2, 3)    # back to NCHW
    indices = idx_row[0, :N].reshape(B, H * W)
    q_loss = (1.0 + BETA) * jnp.sum(ploss[0, :N]) / jnp.float32(N * D)
    return decoded, indices, q_loss


def init_params(key, c_in, latent_dim, num_codes):
    k1, k2, k3 = jax.random.split(key, 3)
    return {
        "w_enc": 0.1 * jax.random.normal(k1, (c_in, latent_dim), jnp.float32),
        "b_enc": jnp.zeros((1, latent_dim), jnp.float32),
        # nn.Embedding-style codebook, uniform(-1/K, 1/K) init like VQGAN
        "codebook": jax.random.uniform(k2, (num_codes, latent_dim), jnp.float32,
                                       minval=-1.0 / num_codes, maxval=1.0 / num_codes),
        "w_dec": 0.1 * jax.random.normal(k3, (latent_dim, c_in), jnp.float32),
        "b_dec": jnp.zeros((1, c_in), jnp.float32),
    }


if __name__ == "__main__":
    B, C, H, W = 2, 4, 16, 16          # embedded_data in NCHW
    LATENT_DIM = 32                    # args.latent_dim
    NUM_CODES = 64                     # args.num_codebook_vectors

    key = jax.random.PRNGKey(0)
    kx, kp = jax.random.split(key)
    x = jax.random.normal(kx, (B, C, H, W), jnp.float32)
    params = init_params(kp, C, LATENT_DIM, NUM_CODES)

    decoded, indices, q_loss = jax.jit(vq_augmentation_forward)(x, params)
    jax.block_until_ready((decoded, indices, q_loss))

    assert decoded.shape == (B, C, H, W)
    assert indices.shape == (B, H * W)
    assert q_loss.shape == ()

    # --- pure-JAX reference check (built around the kernel's own indices so that
    #     floating-point near-ties in the argmin cannot make the check flaky) ---
    x_tok = jnp.transpose(x, (0, 2, 3, 1)).reshape(-1, C)                # (N, C)
    z_ref = x_tok @ params["w_enc"] + params["b_enc"]                    # (N, D)
    cb = params["codebook"]
    d_ref = (jnp.sum(z_ref * z_ref, -1, keepdims=True)
             - 2.0 * z_ref @ cb.T + jnp.sum(cb * cb, -1)[None, :])       # (N, K)
    # tokens in (b, h, w) order match the kernel's (C, B*H*W) flattening via the
    # wrapper transposes; verify chosen codes are true nearest neighbours.
    idx_k = indices.reshape(-1)
    chosen = jnp.take_along_axis(d_ref, idx_k[:, None], axis=1)
    assert bool(jnp.all(chosen <= jnp.min(d_ref, -1, keepdims=True) + 1e-5))
    z_q_ref = cb[idx_k]                                                  # (N, D)
    dec_ref = (z_q_ref @ params["w_dec"] + params["b_dec"]
               ).reshape(B, H, W, C).transpose(0, 3, 1, 2)
    loss_ref = (jnp.mean((z_q_ref - z_ref) ** 2)
                + BETA * jnp.mean((z_q_ref - z_ref) ** 2))
    assert bool(jnp.allclose(decoded, dec_ref, atol=1e-4, rtol=1e-4))
    assert bool(jnp.allclose(q_loss, loss_ref, atol=1e-5, rtol=1e-4))

    print("KERNEL_OK")
</pallas_src>

<mosaic_0001>
module attributes {stable_mosaic.version = 11 : i64} {
  func.func @_vq_fused_kernel(%arg0: i32, %arg1: memref<4x512xf32, #tpu.memory_space<vmem>>, %arg2: memref<32x4xf32, #tpu.memory_space<vmem>>, %arg3: memref<32x1xf32, #tpu.memory_space<vmem>>, %arg4: memref<64x32xf32, #tpu.memory_space<vmem>>, %arg5: memref<32x64xf32, #tpu.memory_space<vmem>>, %arg6: memref<64x1xf32, #tpu.memory_space<vmem>>, %arg7: memref<4x32xf32, #tpu.memory_space<vmem>>, %arg8: memref<4x1xf32, #tpu.memory_space<vmem>>, %arg9: memref<4x512xf32, #tpu.memory_space<vmem>>, %arg10: memref<1x512xi32, #tpu.memory_space<vmem>>, %arg11: memref<1x512xf32, #tpu.memory_space<vmem>>) attributes {dimension_semantics = [#tpu.dimension_semantics<parallel>], iteration_bounds = array<i64: 1>, scalar_prefetch = 0 : i64, scratch_operands = 0 : i64, tpu.core_type = #tpu.core_type<tc>, window_params = [{transform_indices = @transform_0, window_bounds = array<i64: 4, 512>}, {pipeline_mode = #tpu.pipeline_mode<synchronous>, transform_indices = @transform_1, window_bounds = array<i64: 32, 4>}, {pipeline_mode = #tpu.pipeline_mode<synchronous>, transform_indices = @transform_2, window_bounds = array<i64: 32, 1>}, {pipeline_mode = #tpu.pipeline_mode<synchronous>, transform_indices = @transform_3, window_bounds = array<i64: 64, 32>}, {pipeline_mode = #tpu.pipeline_mode<synchronous>, transform_indices = @transform_4, window_bounds = array<i64: 32, 64>}, {pipeline_mode = #tpu.pipeline_mode<synchronous>, transform_indices = @transform_5, window_bounds = array<i64: 64, 1>}, {pipeline_mode = #tpu.pipeline_mode<synchronous>, transform_indices = @transform_6, window_bounds = array<i64: 4, 32>}, {pipeline_mode = #tpu.pipeline_mode<synchronous>, transform_indices = @transform_7, window_bounds = array<i64: 4, 1>}, {transform_indices = @transform_8, window_bounds = array<i64: 4, 512>}, {transform_indices = @transform_9, window_bounds = array<i64: 1, 512>}, {transform_indices = @transform_10, window_bounds = array<i64: 1, 512>}]} {
    %c0 = arith.constant 0 : index
    %c0_0 = arith.constant 0 : index
    %0 = vector.load %arg1[%c0, %c0_0] : memref<4x512xf32, #tpu.memory_space<vmem>>, vector<4x512xf32>
    %c0_1 = arith.constant 0 : index
    %c0_2 = arith.constant 0 : index
    %1 = vector.load %arg2[%c0_1, %c0_2] : memref<32x4xf32, #tpu.memory_space<vmem>>, vector<32x4xf32>
    %cst = arith.constant dense<0.000000e+00> : vector<32x512xf32>
    %2 = tpu.matmul %1, %0, %cst {dimension_numbers = #tpu.dot_dimension_numbers<[1], [0], [0], [1], [0, 0, 1, 1], [], []>} : vector<32x4xf32>, vector<4x512xf32>, vector<32x512xf32> -> vector<32x512xf32>
    %c0_3 = arith.constant 0 : index
    %c0_4 = arith.constant 0 : index
    %3 = vector.load %arg3[%c0_3, %c0_4] : memref<32x1xf32, #tpu.memory_space<vmem>>, vector<32x1xf32>
    %4 = vector.broadcast %3 : vector<32x1xf32> to vector<32x512xf32>
    %5 = arith.addf %2, %4 : vector<32x512xf32>
    %c0_5 = arith.constant 0 : index
    %c0_6 = arith.constant 0 : index
    %6 = vector.load %arg4[%c0_5, %c0_6] : memref<64x32xf32, #tpu.memory_space<vmem>>, vector<64x32xf32>
    %cst_7 = arith.constant dense<0.000000e+00> : vector<64x512xf32>
    %7 = tpu.matmul %6, %5, %cst_7 {dimension_numbers = #tpu.dot_dimension_numbers<[1], [0], [0], [1], [0, 0, 1, 1], [], []>} : vector<64x32xf32>, vector<32x512xf32>, vector<64x512xf32> -> vector<64x512xf32>
    %c0_8 = arith.constant 0 : index
    %c0_9 = arith.constant 0 : index
    %8 = vector.load %arg6[%c0_8, %c0_9] : memref<64x1xf32, #tpu.memory_space<vmem>>, vector<64x1xf32>
    %cst_10 = arith.constant 2.000000e+00 : f32
    %9 = vector.broadcast %cst_10 : f32 to vector<64x512xf32>
    %10 = arith.mulf %9, %7 : vector<64x512xf32>
    %11 = vector.broadcast %8 : vector<64x1xf32> to vector<64x512xf32>
    %12 = arith.subf %11, %10 : vector<64x512xf32>
    %cst_11 = arith.constant dense<0x7F800000> : vector<512xf32>
    %13 = vector.multi_reduction <minimumf>, %12, %cst_11 [0] : vector<64x512xf32> to vector<512xf32>
    %14 = vector.shape_cast %13 : vector<512xf32> to vector<1x512xf32>
    %15 = tpu.iota {dimensions = array<i32: 0>} : vector<64x512xi32>
    %16 = vector.broadcast %14 : vector<1x512xf32> to vector<64x512xf32>
    %17 = arith.cmpf ole, %12, %16 : vector<64x512xf32>
    %c64_i32 = arith.constant 64 : i32
    %18 = vector.broadcast %c64_i32 : i32 to vector<64x512xi32>
    %19 = arith.select %17, %15, %18 : vector<64x512xi1>, vector<64x512xi32>
    %cst_12 = arith.constant dense<2147483647> : vector<512xi32>
    %20 = vector.multi_reduction <minsi>, %19, %cst_12 [0] : vector<64x512xi32> to vector<512xi32>
    %21 = vector.shape_cast %20 : vector<512xi32> to vector<1x512xi32>
    %c0_13 = arith.constant 0 : index
    %c0_14 = arith.constant 0 : index
    %22 = vector.load %arg10[%c0_13, %c0_14] : memref<1x512xi32, #tpu.memory_space<vmem>>, vector<1x512xi32>
    tpu.vector_store %arg10[%c0_13, %c0_14], %21 {strides = array<i32>} : memref<1x512xi32, #tpu.memory_space<vmem>>, vector<1x512xi32>,
    %23 = vector.broadcast %21 : vector<1x512xi32> to vector<64x512xi32>
    %24 = arith.cmpi eq, %15, %23 : vector<64x512xi32>
    %25 = arith.extui %24 : vector<64x512xi1> to vector<64x512xi32>
    %26 = arith.sitofp %25 : vector<64x512xi32> to vector<64x512xf32>
    %c0_15 = arith.constant 0 : index
    %c0_16 = arith.constant 0 : index
    %27 = vector.load %arg5[%c0_15, %c0_16] : memref<32x64xf32, #tpu.memory_space<vmem>>, vector<32x64xf32>
    %cst_17 = arith.constant dense<0.000000e+00> : vector<32x512xf32>
    %28 = tpu.matmul %27, %26, %cst_17 {dimension_numbers = #tpu.dot_dimension_numbers<[1], [0], [0], [1], [0, 0, 1, 1], [], []>} : vector<32x64xf32>, vector<64x512xf32>, vector<32x512xf32> -> vector<32x512xf32>
    %29 = arith.subf %28, %5 : vector<32x512xf32>
    %30 = arith.mulf %29, %29 : vector<32x512xf32>
    %cst_18 = arith.constant dense<0.000000e+00> : vector<512xf32>
    %31 = vector.multi_reduction <add>, %30, %cst_18 [0] : vector<32x512xf32> to vector<512xf32>
    %32 = vector.shape_cast %31 : vector<512xf32> to vector<1x512xf32>
    %c0_19 = arith.constant 0 : index
    %c0_20 = arith.constant 0 : index
    %33 = vector.load %arg11[%c0_19, %c0_20] : memref<1x512xf32, #tpu.memory_space<vmem>>, vector<1x512xf32>
    tpu.vector_store %arg11[%c0_19, %c0_20], %32 {strides = array<i32>} : memref<1x512xf32, #tpu.memory_space<vmem>>, vector<1x512xf32>,
    %c0_21 = arith.constant 0 : index
    %c0_22 = arith.constant 0 : index
    %34 = vector.load %arg7[%c0_21, %c0_22] : memref<4x32xf32, #tpu.memory_space<vmem>>, vector<4x32xf32>
    %cst_23 = arith.constant dense<0.000000e+00> : vector<4x512xf32>
    %35 = tpu.matmul %34, %28, %cst_23 {dimension_numbers = #tpu.dot_dimension_numbers<[1], [0], [0], [1], [0, 0, 1, 1], [], []>} : vector<4x32xf32>, vector<32x512xf32>, vector<4x512xf32> -> vector<4x512xf32>
    %c0_24 = arith.constant 0 : index
    %c0_25 = arith.constant 0 : index
    %36 = vector.load %arg8[%c0_24, %c0_25] : memref<4x1xf32, #tpu.memory_space<vmem>>, vector<4x1xf32>
    %37 = vector.broadcast %36 : vector<4x1xf32> to vector<4x512xf32>
    %38 = arith.addf %35, %37 : vector<4x512xf32>
    %c0_26 = arith.constant 0 : index
    %c0_27 = arith.constant 0 : index
    %39 = vector.load %arg9[%c0_26, %c0_27] : memref<4x512xf32, #tpu.memory_space<vmem>>, vector<4x512xf32>
    tpu.vector_store %arg9[%c0_26, %c0_27], %38 {strides = array<i32>} : memref<4x512xf32, #tpu.memory_space<vmem>>, vector<4x512xf32>,
    return
  }
  func.func @transform_0(%arg0: i32) -> (i32, i32) {
    %c0_i32 = arith.constant 0 : i32
    %c0_i32_0 = arith.constant 0 : i32
    return %c0_i32, %arg0 : i32, i32
  }
  func.func @transform_1(%arg0: i32) -> (i32, i32) {
    %c0_i32 = arith.constant 0 : i32
    %c0_i32_0 = arith.constant 0 : i32
    %c0_i32_1 = arith.constant 0 : i32
    return %c0_i32, %c0_i32_0 : i32, i32
  }
  func.func @transform_2(%arg0: i32) -> (i32, i32) {
    %c0_i32 = arith.constant 0 : i32
    %c0_i32_0 = arith.constant 0 : i32
    %c0_i32_1 = arith.constant 0 : i32
    return %c0_i32, %c0_i32_0 : i32, i32
  }
  func.func @transform_3(%arg0: i32) -> (i32, i32) {
    %c0_i32 = arith.constant 0 : i32
    %c0_i32_0 = arith.constant 0 : i32
    %c0_i32_1 = arith.constant 0 : i32
    return %c0_i32, %c0_i32_0 : i32, i32
  }
  func.func @transform_4(%arg0: i32) -> (i32, i32) {
    %c0_i32 = arith.constant 0 : i32
    %c0_i32_0 = arith.constant 0 : i32
    %c0_i32_1 = arith.constant 0 : i32
    return %c0_i32, %c0_i32_0 : i32, i32
  }
  func.func @transform_5(%arg0: i32) -> (i32, i32) {
    %c0_i32 = arith.constant 0 : i32
    %c0_i32_0 = arith.constant 0 : i32
    %c0_i32_1 = arith.constant 0 : i32
    return %c0_i32, %c0_i32_0 : i32, i32
  }
  func.func @transform_6(%arg0: i32) -> (i32, i32) {
    %c0_i32 = arith.constant 0 : i32
    %c0_i32_0 = arith.constant 0 : i32
    %c0_i32_1 = arith.constant 0 : i32
    return %c0_i32, %c0_i32_0 : i32, i32
  }
  func.func @transform_7(%arg0: i32) -> (i32, i32) {
    %c0_i32 = arith.constant 0 : i32
    %c0_i32_0 = arith.constant 0 : i32
    %c0_i32_1 = arith.constant 0 : i32
    return %c0_i32, %c0_i32_0 : i32, i32
  }
  func.func @transform_8(%arg0: i32) -> (i32, i32) {
    %c0_i32 = arith.constant 0 : i32
    %c0_i32_0 = arith.constant 0 : i32
    return %c0_i32, %arg0 : i32, i32
  }
  func.func @transform_9(%arg0: i32) -> (i32, i32) {
    %c0_i32 = arith.constant 0 : i32
    %c0_i32_0 = arith.constant 0 : i32
    return %c0_i32, %arg0 : i32, i32
  }
  func.func @transform_10(%arg0: i32) -> (i32, i32) {
    %c0_i32 = arith.constant 0 : i32
    %c0_i32_0 = arith.constant 0 : i32
    return %c0_i32, %arg0 : i32, i32
  }
}

</mosaic_0001>

<bundles_post_ra>
// kernel: squeeze.2
= control target key start
LH: loop header
LB: loop body
LE: loop exit
PB: predicated region body
PF: predicated region fallthrough
CT: control target
= control target key end

     0   :  { %2 = vsyncpa [#allocation1], 0  ;;  %s83_s0 = inlined_call_operand.vmem [shape: s32[512], index: 0, kind: input, shape index: {}]   ;;  %s84_s1 = inlined_call_operand.hbm [shape: s32[2,256], index: 1, kind: output, shape index: {}]  }
   0x1   :  { %v5_v0 = vld [vmem:[%s83_s0] sm:$0xf]  ;;  %s57_s0 = smov [#allocation0]  }
   0x2   :  { %6 = vst [vmem:[#allocation3] sm:$0xf] %v5_v0  ;;  %s26_s8 = sshll.u32 %s57_s0, 4  ;;  %s27_s8 = int_to_ptr.vmem [resolvable:$true] %s26_s8 }
   0x3   :  { %s33_s9 = scalar_lea.vmem %s27_s8, 64  ;;  %p38_p1 = scmp.lt.s32.totalorder %s27_s8, %s27_s8 }
   0x4   :  { %p34_p0 = scmp.ne.s32.totalorder %s27_s8, %s33_s9  ;;  %p39_p2 = scmp.lt.s32.totalorder %s33_s9, %s33_s9 }
   0x6   :  { %p40_p3 = por %p39_p2, %p38_p1 }
   0x8   :  { %p41_p4 = pnand %p40_p3, %p34_p0 }
   0x9   :  { %v7_v1 = vld [vmem:[#allocation3] sm:$0xf]  }
   0xa   :  { %8 = vst [vmem:[#allocation2] ss:$8 sm:$0x3] %v7_v1   ;;  %10 = vst [vmem:[#allocation2 - $0xf] ss:$8 sm:$0xc] %v7_v1  }
  0x11   :  { %v14_v2 = vld [vmem:[#allocation2] sm:$0x3]  ;;  %v18_v3 = vld [vmem:[#allocation2 + $0x8] sm:$0x3] }
  0x12   :  { %16 = vst [vmem:[#allocation0] sm:$0x3] %v14_v2  ;;  %21 = vst [vmem:[#allocation0 + $0x2] sm:$0x3] %v18_v3 }
  0x13   :  { %44 = shalt.err (!%p41_p4)
}
  0x14   :  { %s45_s12 = scalar_lea.hbm %s84_s1, 64 }
  0x15   :  { %p46_p5 = scmp.ne.s32.totalorder %s84_s1, %s45_s12  ;;  %p49_p6 = scmp.lt.u32.totalorder %s45_s12, %s84_s1 }
  0x17   :  { %p51_p7 = pnand %p49_p6, %p46_p5 }
  0x19   :  { %54 = shalt.err (!%p51_p7)
}
  0x1a   :  { %29 = dma.vmem_to_hbm [thread:$0]  %s27_s8, 64, %s84_s1, [#allocation1]  }
  0x1b   :  { %55 = dma.done.wait [#allocation1], 64  }
  0x1c   :  { %56 = vsyncadd [#allocation1], 4294967232 }
  0x1d   :  { %31 = vsyncpa [#allocation1], 1 }

// kernel: vq_augmentation_forward.1
= control target key start
LH: loop header
LB: loop body
LE: loop exit
PB: predicated region body
PF: predicated region fallthrough
CT: control target
= control target key end

     0   :  { %vm79_vm0 = vcmask 1043456   ;;  %v2302_v2 = vmov 0.0   ;;  %v1621_v5 = vmov 0   ;;  %vm66_vm1 = vcmask 31744   ;;  %s2291_s0 = inlined_call_operand.vmem [shape: f32[4,512], index: 0, kind: input, shape index: {}]   ;;  %s2292_s1 = inlined_call_operand.vmem [shape: f32[32,4], index: 1, kind: input, shape index: {}]   ;;  %s2293_s2 = inlined_call_operand.vmem [shape: f32[32,1], index: 2, kind: input, shape index: {}]   ;;  %s2294_s5 = inlined_call_operand.vmem [shape: f32[64,1], index: 5, kind: input, shape index: {}]   ;;  %s2295_s7 = inlined_call_operand.vmem [shape: f32[4,1], index: 7, kind: input, shape index: {}]   ;;  %s2296_s3 = inlined_call_operand.vmem [shape: f32[64,32], index: 3, kind: input, shape index: {}]   ;;  %s2297_s4 = inlined_call_operand.vmem [shape: f32[32,64], index: 4, kind: input, shape index: {}]   ;;  %s2298_s9 = inlined_call_operand.vmem [shape: s32[1,512], index: 9, kind: output, shape index: {1}]   ;;  %s2299_s6 = inlined_call_operand.vmem [shape: f32[4,32], index: 6, kind: input, shape index: {}]   ;;  %s2300_s10 = inlined_call_operand.vmem [shape: f32[1,512], index: 10, kind: output, shape index: {2}]   ;;  %s2301_s8 = inlined_call_operand.vmem [shape: f32[4,512], index: 8, kind: output, shape index: {0}]  }
   0x1   :  { %v32_v0 = vld [vmem:[%s2291_s0] sm:$0xff]  ;;  %v33_v1 = vld [vmem:[%s2291_s0 + $0x8] sm:$0xff]  ;;  %152 = vmatprep.mubr.f32.mxu0 %v2302_v2  ;;  %241 = vmatprep.mubr.f32.mxu1 %v2302_v2  ;;  %v40_v8 = vld [vmem:[%s2293_s2 + $0x10] sm:$0xff]  ;;  %vm274_vm2 = vcmask 261120  }
   0x2   :  { %v64_v3 = vcombine.high %v32_v0, %v32_v0  ;;  %v65_v4 = vcombine.high %v33_v1, %v33_v1  ;;  %1616 = vset.pattern.permute.xlu0 %v1621_v5  ;;  %1617 = vset.pattern.permute.xlu1 %v1621_v5  ;;  %v34_v6 = vld [vmem:[%s2292_s1] sm:$0xff]  ;;  %v35_v9 = vld [vmem:[%s2292_s1 + $0x8] sm:$0xff]  ;;  %v41_v11 = vld [vmem:[%s2293_s2 + $0x18] sm:$0xff] }
   0x3   :  { %v38_v7 = vld [vmem:[%s2293_s2] sm:$0xff]  ;;  %54 = vperm.xlu1 %1617, %v40_v8   ;;  %v39_v10 = vld [vmem:[%s2293_s2 + $0x8] sm:$0xff]  ;;  %v36_v12 = vld [vmem:[%s2292_s1 + $0x10] sm:$0xff] }
   0x4   :  { %1446 = vmatprep.subr.msk.mxu0 %vm79_vm0, %v64_v3  ;;  %1452 = vmatprep.subr.msk.mxu1 %vm79_vm0, %v65_v4  ;;  %v525_v13 = vld [vmem:[%s2294_s5] sm:$0xff]  ;;  %v526_v14 = vld [vmem:[%s2294_s5 + $0x8] sm:$0xff]  ;;  %v37_v15 = vld [vmem:[%s2292_s1 + $0x18] sm:$0xff] }
   0x5   :  { %1447 = vmatpush1.msk.msra.mxu0 %vm79_vm0, %v32_v0  ;;  %1453 = vmatpush1.msk.msra.mxu1 %vm79_vm0, %v33_v1  ;;  %v527_v16 = vld [vmem:[%s2294_s5 + $0x10] sm:$0xff]  ;;  %v528_v17 = vld [vmem:[%s2294_s5 + $0x18] sm:$0xff]  ;;  %v529_v18 = vld [vmem:[%s2294_s5 + $0x20] sm:$0xff] }
   0x6   :  { %1448 = vmatmul.mubr.msk.f32.vlgmr.msra.gmra.mrb[0].mxu0 %vm66_vm1, %v34_v6  ;;  %1454 = vmatmul.mubr.msk.f32.vlgmr.msra.gmra.mrb[0].mxu1 %vm66_vm1, %v34_v6  ;;  %v530_v19 = vld [vmem:[%s2294_s5 + $0x28] sm:$0xff]  ;;  %v531_v20 = vld [vmem:[%s2294_s5 + $0x30] sm:$0xff]  ;;  %v532_v21 = vld [vmem:[%s2294_s5 + $0x38] sm:$0xff] }
   0x7   :  { %158 = vmatprep.mubr.f32.mxu0 %v2302_v2  ;;  %247 = vmatprep.mubr.f32.mxu1 %v2302_v2  ;;  %v1273_v22 = vld [vmem:[%s2295_s7] sm:$0xf]  ;;  %v267_v5 = vld [vmem:[%s2296_s3 + $0x8] sm:$0xff]  ;;  %v268_v6 = vld [vmem:[%s2296_s3 + $0x10] sm:$0xff] }
   0x8   :  { %44 = vperm.xlu0 %1616, %v38_v7   ;;  %59 = vperm.xlu1 %1617, %v41_v11   ;;  %v266_v4 = vld [vmem:[%s2296_s3] sm:$0xff]  ;;  %v269_v7 = vld [vmem:[%s2296_s3 + $0x18] sm:$0xff] }
   0x9   :  { %v270_v8 = vld [vmem:[%s2296_s3 + $0x20] sm:$0xff]  ;;  %v273_v11 = vld [vmem:[%s2296_s3 + $0x38] sm:$0xff] }
   0xa   :  { %1449 = vmatmul.mubr.msk.f32.gmra.mrb[2].mxu0 %vm66_vm1, %v35_v9  ;;  %1455 = vmatmul.mubr.msk.f32.gmra.mrb[2].mxu1 %vm66_vm1, %v35_v9  ;;  %v271_v9 = vld [vmem:[%s2296_s3 + $0x28] sm:$0xff] }
   0xb   :  { %164 = vmatprep.mubr.f32.mxu0 %v2302_v2  ;;  %253 = vmatprep.mubr.f32.mxu1 %v2302_v2 }
   0xc   :  { %49 = vperm.xlu0 %1616, %v39_v10   ;;  %572 = vperm.xlu1 %1617, %v526_v14   ;;  %v272_v10 = vld [vmem:[%s2296_s3 + $0x30] sm:$0xff] }
   0xe   :  { %1450 = vmatmul.mubr.msk.f32.gmra.mrb[4].mxu0 %vm66_vm1, %v36_v12  ;;  %1456 = vmatmul.mubr.msk.f32.gmra.mrb[4].mxu1 %vm66_vm1, %v36_v12 }
   0xf   :  { %170 = vmatprep.mubr.f32.mxu0 %v2302_v2  ;;  %259 = vmatprep.mubr.f32.mxu1 %v2302_v2 }
  0x10   :  { %567 = vperm.xlu0 %1616, %v525_v13   ;;  %582 = vperm.xlu1 %1617, %v528_v17  }
  0x12   :  { %1451 = vmatmul.mubr.msk.f32.gmra.mrb[6].mxu0 %vm66_vm1, %v37_v15  ;;  %1457 = vmatmul.mubr.msk.f32.gmra.mrb[6].mxu1 %vm66_vm1, %v37_v15 }
  0x13   :  { %363 = vmatprep.mubr.f32.mxu0 %v2302_v2  ;;  %476 = vmatprep.mubr.f32.mxu1 %v2302_v2 }
  0x14   :  { %577 = vperm.xlu0 %1616, %v527_v16   ;;  %592 = vperm.xlu1 %1617, %v530_v19  }
  0x18   :  { %587 = vperm.xlu0 %1616, %v529_v18   ;;  %602 = vperm.xlu1 %1617, %v532_v21  }
  0x1c   :  { %597 = vperm.xlu0 %1616, %v531_v20  }
  0x20   :  { %1276 = vperm.xlu0 %1616, %v1273_v22  }
  0x82   :  { %v55_v29 = vpop.permute.xlu1 %54 }
  0x87   :  { %v45_v23 = vpop.permute.xlu0 %44  ;;  %v60_v50 = vpop.permute.xlu1 %59 }
  0x8b   :  { %v50_v28 = vpop.permute.xlu0 %49 }
  0x8f   :  { %v568_v16 = vpop.permute.xlu0 %567 }
  0xd9   :  { %v154_v24 = vpop.f32.mrb[0].mxu0  ;;  %v243_v25 = vpop.f32.mrb[0].mxu1 }
  0xda   :  { %v156_v26 = vpop.f32.mrb[1].mxu0  ;;  %v245_v27 = vpop.f32.mrb[1].mxu1  ;;  %v1770_v40 = vadd.f32 %v154_v24, %v45_v23  ;;  %v1772_v41 = vadd.f32 %v243_v25, %v45_v23 }
  0xdb   :  { %v1762_v36 = vadd.f32 %v156_v26, %v45_v23  ;;  %v1764_v37 = vadd.f32 %v245_v27, %v45_v23  ;;  %v573_v27 = vpop.permute.xlu1 %572 }
  0xdc   :  { %2316 = vst [vmem:[#allocation5_spill] sm:$0xff] %v1772_v41 }
  0xdd   :  { %v160_v30 = vpop.f32.mrb[2].mxu0  ;;  %v249_v31 = vpop.f32.mrb[2].mxu1  ;;  %2314 = vst [vmem:[#allocation3_spill] sm:$0xff] %v1764_v37 }
  0xde   :  { %v1758_v32 = vadd.f32 %v160_v30, %v50_v28  ;;  %v1760_v33 = vadd.f32 %v249_v31, %v50_v28  ;;  %v162_v34 = vpop.f32.mrb[3].mxu0  ;;  %v251_v35 = vpop.f32.mrb[3].mxu1 }
  0xdf   :  { %v1766_v38 = vadd.f32 %v162_v34, %v50_v28  ;;  %v1768_v39 = vadd.f32 %v251_v35, %v50_v28 }
  0xe0   :  { %2313 = vst [vmem:[#allocation2_spill] sm:$0xff] %v1760_v33  ;;  %v1550_v46 = vpack.c.bf16 %v1758_v32, %v1770_v40  ;;  %v1558_v47 = vpack.c.bf16 %v1760_v33, %v1772_v41 }
  0xe1   :  { %2315 = vst [vmem:[#allocation4_spill] sm:$0xff] %v1768_v39  ;;  %v1548_v42 = vpack.c.bf16 %v1766_v38, %v1762_v36  ;;  %v1556_v43 = vpack.c.bf16 %v1768_v39, %v1764_v37  ;;  %v166_v44 = vpop.f32.mrb[4].mxu0  ;;  %v255_v45 = vpop.f32.mrb[4].mxu1 }
  0xe2   :  { %v168_v48 = vpop.f32.mrb[5].mxu0  ;;  %v257_v49 = vpop.f32.mrb[5].mxu1  ;;  %v1794_v61 = vadd.f32 %v166_v44, %v55_v29  ;;  %v1796_v62 = vadd.f32 %v255_v45, %v55_v29 }
  0xe3   :  { %1549 = vmatprep.subr.bf16.mxu0 %v1548_v42  ;;  %1557 = vmatprep.subr.bf16.mxu1 %v1556_v43  ;;  %v1786_v57 = vadd.f32 %v168_v48, %v55_v29  ;;  %v1788_v58 = vadd.f32 %v257_v49, %v55_v29 }
  0xe4   :  { %1551 = vmatpush1.bf16.msra.mxu0 %v1550_v46  ;;  %1559 = vmatpush1.bf16.msra.mxu1 %v1558_v47  ;;  %2321 = vst [vmem:[#allocation10_spill] sm:$0xff] %v1796_v62 }
  0xe5   :  { %v172_v51 = vpop.f32.mrb[6].mxu0  ;;  %v261_v52 = vpop.f32.mrb[6].mxu1  ;;  %2318 = vst [vmem:[#allocation7_spill] sm:$0xff] %v1788_v58 }
  0xe6   :  { %v1782_v53 = vadd.f32 %v172_v51, %v60_v50  ;;  %v1784_v54 = vadd.f32 %v261_v52, %v60_v50  ;;  %v174_v55 = vpop.f32.mrb[7].mxu0  ;;  %v263_v56 = vpop.f32.mrb[7].mxu1 }
  0xe7   :  { %v1790_v59 = vadd.f32 %v174_v55, %v60_v50  ;;  %v1792_v60 = vadd.f32 %v263_v56, %v60_v50  ;;  %v578_v56 = vpop.permute.xlu0 %577 }
  0xe8   :  { %2317 = vst [vmem:[#allocation6_spill] sm:$0xff] %v1784_v54  ;;  %v1554_v1 = vpack.c.bf16 %v1782_v53, %v1794_v61  ;;  %v1562_v3 = vpack.c.bf16 %v1784_v54, %v1796_v62 }
  0xe9   :  { %2319 = vst [vmem:[#allocation8_spill] sm:$0xff] %v1790_v59  ;;  %2320 = vst [vmem:[#allocation9_spill] sm:$0xff] %v1792_v60  ;;  %v1552_v63 = vpack.c.bf16 %v1790_v59, %v1786_v57  ;;  %v1560_v0 = vpack.c.bf16 %v1792_v60, %v1788_v58 }
  0xeb   :  { %1553 = vmatprep.subr.bf16.mxu0 %v1552_v63  ;;  %1561 = vmatprep.subr.bf16.mxu1 %v1560_v0 }
  0xec   :  { %1555 = vmatpush1.bf16.msra.mxu0 %v1554_v1  ;;  %1563 = vmatpush1.bf16.msra.mxu1 %v1562_v3 }
  0xef   :  { %1458 = vmatmul.mubr.msk.f32.vlgmr.msra.gmra.mrb[8].mxu0 %vm274_vm2, %v266_v4  ;;  %1466 = vmatmul.mubr.msk.f32.vlgmr.msra.gmra.mrb[8].mxu1 %vm274_vm2, %v266_v4 }
  0xf0   :  { %369 = vmatprep.mubr.f32.mxu0 %v2302_v2  ;;  %482 = vmatprep.mubr.f32.mxu1 %v2302_v2 }
  0xf3   :  { %1459 = vmatmul.mubr.msk.f32.gmra.mrb[10].mxu0 %vm274_vm2, %v267_v5  ;;  %1467 = vmatmul.mubr.msk.f32.gmra.mrb[10].mxu1 %vm274_vm2, %v267_v5 }
  0xf4   :  { %375 = vmatprep.mubr.f32.mxu0 %v2302_v2  ;;  %488 = vmatprep.mubr.f32.mxu1 %v2302_v2 }
  0xf7   :  { %1460 = vmatmul.mubr.msk.f32.gmra.mrb[12].mxu0 %vm274_vm2, %v268_v6  ;;  %1468 = vmatmul.mubr.msk.f32.gmra.mrb[12].mxu1 %vm274_vm2, %v268_v6 }
  0xf8   :  { %381 = vmatprep.mubr.f32.mxu0 %v2302_v2  ;;  %494 = vmatprep.mubr.f32.mxu1 %v2302_v2 }
  0xfb   :  { %1461 = vmatmul.mubr.msk.f32.gmra.mrb[14].mxu0 %vm274_vm2, %v269_v7  ;;  %1469 = vmatmul.mubr.msk.f32.gmra.mrb[14].mxu1 %vm274_vm2, %v269_v7 }
  0xfc   :  { %387 = vmatprep.mubr.f32.mxu0 %v2302_v2  ;;  %500 = vmatprep.mubr.f32.mxu1 %v2302_v2 }
  0xff   :  { %1462 = vmatmul.mubr.msk.f32.gmra.mrb[16].mxu0 %vm274_vm2, %v270_v8  ;;  %1470 = vmatmul.mubr.msk.f32.gmra.mrb[16].mxu1 %vm274_vm2, %v270_v8 }
 0x100   :  { %393 = vmatprep.mubr.f32.mxu0 %v2302_v2  ;;  %506 = vmatprep.mubr.f32.mxu1 %v2302_v2 }
 0x103   :  { %1463 = vmatmul.mubr.msk.f32.gmra.mrb[18].mxu0 %vm274_vm2, %v271_v9  ;;  %1471 = vmatmul.mubr.msk.f32.gmra.mrb[18].mxu1 %vm274_vm2, %v271_v9 }
 0x104   :  { %399 = vmatprep.mubr.f32.mxu0 %v2302_v2  ;;  %512 = vmatprep.mubr.f32.mxu1 %v2302_v2 }
 0x107   :  { %1464 = vmatmul.mubr.msk.f32.gmra.mrb[20].mxu0 %vm274_vm2, %v272_v10  ;;  %1472 = vmatmul.mubr.msk.f32.gmra.mrb[20].mxu1 %vm274_vm2, %v272_v10 }
 0x108   :  { %405 = vmatprep.mubr.f32.mxu0 %v2302_v2  ;;  %518 = vmatprep.mubr.f32.mxu1 %v2302_v2 }
 0x10b   :  { %1465 = vmatmul.mubr.msk.f32.gmra.mrb[22].mxu0 %vm274_vm2, %v273_v11  ;;  %1473 = vmatmul.mubr.msk.f32.gmra.mrb[22].mxu1 %vm274_vm2, %v273_v11 }
 0x10c   :  { %1060 = vmatprep.mubr.f32.mxu0 %v2302_v2  ;;  %1149 = vmatprep.mubr.f32.mxu1 %v2302_v2 }
 0x1c2   :  { %v365_v12 = vpop.f32.mrb[8].mxu0  ;;  %v478_v13 = vpop.f32.mrb[8].mxu1 }
 0x1c3   :  { %v367_v14 = vpop.f32.mrb[9].mxu0  ;;  %v480_v15 = vpop.f32.mrb[9].mxu1  ;;  %v533_v17 = vmul.f32 2.0, %v365_v12  ;;  %v535_v18 = vmul.f32 2.0, %v478_v13 }
 0x1c4   :  { %v534_v19 = vmul.f32 2.0, %v367_v14  ;;  %v536_v20 = vmul.f32 2.0, %v480_v15 }
 0x1c5   :  { %v1862_v30 = vsub.f32 %v568_v16, %v533_v17  ;;  %v1864_v31 = vsub.f32 %v568_v16, %v535_v18 }
 0x1c6   :  { %v371_v21 = vpop.f32.mrb[10].mxu0  ;;  %v484_v22 = vpop.f32.mrb[10].mxu1  ;;  %v1870_v42 = vsub.f32 %v568_v16, %v534_v19  ;;  %v1872_v43 = vsub.f32 %v568_v16, %v536_v20 }
 0x1c7   :  { %v537_v23 = vmul.f32 2.0, %v371_v21  ;;  %v539_v24 = vmul.f32 2.0, %v484_v22  ;;  %v373_v25 = vpop.f32.mrb[11].mxu0  ;;  %v486_v26 = vpop.f32.mrb[11].mxu1 }
 0x1c8   :  { %v538_v28 = vmul.f32 2.0, %v373_v25  ;;  %v540_v29 = vmul.f32 2.0, %v486_v26  ;;  %v583_v16 = vpop.permute.xlu1 %582 }
 0x1c9   :  { %v1866_v34 = vsub.f32 %v573_v27, %v537_v23  ;;  %v1868_v35 = vsub.f32 %v573_v27, %v539_v24 }
 0x1ca   :  { %v1874_v44 = vsub.f32 %v573_v27, %v538_v28  ;;  %v1876_v45 = vsub.f32 %v573_v27, %v540_v29  ;;  %v377_v46 = vpop.f32.mrb[12].mxu0  ;;  %v490_v47 = vpop.f32.mrb[12].mxu1 }
 0x1cb   :  { %v637_v48 = vmin.f32 %v1862_v30, %v1866_v34  ;;  %v663_v49 = vmin.f32 %v1864_v31, %v1868_v35  ;;  %v541_v50 = vmul.f32 2.0, %v377_v46  ;;  %v543_v51 = vmul.f32 2.0, %v490_v47  ;;  %v379_v52 = vpop.f32.mrb[13].mxu0  ;;  %v492_v55 = vpop.f32.mrb[13].mxu1 }
 0x1cc   :  { %v650_v63 = vmin.f32 %v1870_v42, %v1874_v44  ;;  %v676_v0 = vmin.f32 %v1872_v43, %v1876_v45  ;;  %v542_v1 = vmul.f32 2.0, %v379_v52  ;;  %v544_v3 = vmul.f32 2.0, %v492_v55 }
 0x1cd   :  { %v1886_v4 = vsub.f32 %v578_v56, %v541_v50  ;;  %v1888_v5 = vsub.f32 %v578_v56, %v543_v51 }
 0x1ce   :  { %v1890_v6 = vsub.f32 %v578_v56, %v542_v1  ;;  %v1892_v7 = vsub.f32 %v578_v56, %v544_v3  ;;  %v383_v8 = vpop.f32.mrb[14].mxu0  ;;  %v496_v9 = vpop.f32.mrb[14].mxu1 }
 0x1cf   :  { %v638_v10 = vmin.f32 %v637_v48, %v1886_v4  ;;  %v664_v11 = vmin.f32 %v663_v49, %v1888_v5  ;;  %v545_v12 = vmul.f32 2.0, %v383_v8  ;;  %v547_v13 = vmul.f32 2.0, %v496_v9  ;;  %v385_v14 = vpop.f32.mrb[15].mxu0  ;;  %v498_v15 = vpop.f32.mrb[15].mxu1 }
 0x1d0   :  { %v651_v17 = vmin.f32 %v650_v63, %v1890_v6  ;;  %v677_v18 = vmin.f32 %v676_v0, %v1892_v7  ;;  %v546_v19 = vmul.f32 2.0, %v385_v14  ;;  %v548_v20 = vmul.f32 2.0, %v498_v15  ;;  %v588_v49 = vpop.permute.xlu0 %587  ;;  %v593_v15 = vpop.permute.xlu1 %592 }
 0x1d1   :  { %v1898_v21 = vsub.f32 %v583_v16, %v545_v12  ;;  %v1900_v22 = vsub.f32 %v583_v16, %v547_v13 }
 0x1d2   :  { %v1902_v23 = vsub.f32 %v583_v16, %v546_v19  ;;  %v1904_v24 = vsub.f32 %v583_v16, %v548_v20  ;;  %v389_v25 = vpop.f32.mrb[16].mxu0  ;;  %v502_v26 = vpop.f32.mrb[16].mxu1 }
 0x1d3   :  { %v639_v27 = vmin.f32 %v638_v10, %v1898_v21  ;;  %v665_v28 = vmin.f32 %v664_v11, %v1900_v22  ;;  %v549_v29 = vmul.f32 2.0, %v389_v25  ;;  %v551_v46 = vmul.f32 2.0, %v502_v26  ;;  %v391_v47 = vpop.f32.mrb[17].mxu0  ;;  %v504_v48 = vpop.f32.mrb[17].mxu1 }
 0x1d4   :  { %v652_v50 = vmin.f32 %v651_v17, %v1902_v23  ;;  %v678_v51 = vmin.f32 %v677_v18, %v1904_v24  ;;  %v550_v52 = vmul.f32 2.0, %v391_v47  ;;  %v552_v55 = vmul.f32 2.0, %v504_v48 }
 0x1d5   :  { %v1910_v56 = vsub.f32 %v588_v49, %v549_v29  ;;  %v1912_v63 = vsub.f32 %v588_v49, %v551_v46 }
 0x1d6   :  { %v1914_v0 = vsub.f32 %v588_v49, %v550_v52  ;;  %v1916_v1 = vsub.f32 %v588_v49, %v552_v55  ;;  %v395_v3 = vpop.f32.mrb[18].mxu0  ;;  %v508_v8 = vpop.f32.mrb[18].mxu1 }
 0x1d7   :  { %v640_v9 = vmin.f32 %v639_v27, %v1910_v56  ;;  %v666_v10 = vmin.f32 %v665_v28, %v1912_v63  ;;  %v553_v11 = vmul.f32 2.0, %v395_v3  ;;  %v555_v12 = vmul.f32 2.0, %v508_v8  ;;  %v397_v13 = vpop.f32.mrb[19].mxu0  ;;  %v510_v14 = vpop.f32.mrb[19].mxu1 }
 0x1d8   :  { %v653_v16 = vmin.f32 %v652_v50, %v1914_v0  ;;  %v679_v17 = vmin.f32 %v678_v51, %v1916_v1  ;;  %v554_v18 = vmul.f32 2.0, %v397_v13  ;;  %v556_v19 = vmul.f32 2.0, %v510_v14  ;;  %v598_v52 = vpop.permute.xlu0 %597 }
 0x1d9   :  { %v1922_v20 = vsub.f32 %v593_v15, %v553_v11  ;;  %v1924_v25 = vsub.f32 %v593_v15, %v555_v12 }
 0x1da   :  { %v1926_v26 = vsub.f32 %v593_v15, %v554_v18  ;;  %v1928_v27 = vsub.f32 %v593_v15, %v556_v19  ;;  %v401_v28 = vpop.f32.mrb[20].mxu0  ;;  %v514_v29 = vpop.f32.mrb[20].mxu1 }
 0x1db   :  { %v641_v46 = vmin.f32 %v640_v9, %v1922_v20  ;;  %v667_v47 = vmin.f32 %v666_v10, %v1924_v25  ;;  %v557_v48 = vmul.f32 2.0, %v401_v28  ;;  %v559_v49 = vmul.f32 2.0, %v514_v29  ;;  %v403_v50 = vpop.f32.mrb[21].mxu0  ;;  %v516_v51 = vpop.f32.mrb[21].mxu1 }
 0x1dc   :  { %v654_v55 = vmin.f32 %v653_v16, %v1926_v26  ;;  %v680_v3 = vmin.f32 %v679_v17, %v1928_v27  ;;  %v558_v8 = vmul.f32 2.0, %v403_v50  ;;  %v560_v11 = vmul.f32 2.0, %v516_v51  ;;  %v603_v50 = vpop.permute.xlu1 %602 }
 0x1dd   :  { %v1934_v12 = vsub.f32 %v598_v52, %v557_v48  ;;  %v1936_v13 = vsub.f32 %v598_v52, %v559_v49 }
 0x1de   :  { %v1938_v14 = vsub.f32 %v598_v52, %v558_v8  ;;  %v1940_v9 = vsub.f32 %v598_v52, %v560_v11  ;;  %v407_v10 = vpop.f32.mrb[22].mxu0  ;;  %v520_v15 = vpop.f32.mrb[22].mxu1 }
 0x1df   :  { %v642_v18 = vmin.f32 %v641_v46, %v1934_v12  ;;  %v668_v19 = vmin.f32 %v667_v47, %v1936_v13  ;;  %v561_v28 = vmul.f32 2.0, %v407_v10  ;;  %v563_v16 = vmul.f32 2.0, %v520_v15  ;;  %v409_v29 = vpop.f32.mrb[23].mxu0  ;;  %v522_v17 = vpop.f32.mrb[23].mxu1 }
 0x1e0   :  { %v655_v48 = vmin.f32 %v654_v55, %v1938_v14  ;;  %v681_v49 = vmin.f32 %v680_v3, %v1940_v9  ;;  %v562_v51 = vmul.f32 2.0, %v409_v29  ;;  %v564_v8 = vmul.f32 2.0, %v522_v17 }
 0x1e1   :  { %v1946_v2 = vsub.f32 %v603_v50, %v561_v28  ;;  %v1948_v52 = vsub.f32 %v603_v50, %v563_v16  ;;  %v689_v29 = vlaneseq }
 0x1e2   :  { %v1950_v11 = vsub.f32 %v603_v50, %v562_v51  ;;  %v1952_v46 = vsub.f32 %v603_v50, %v564_v8 }
 0x1e3   :  { %v643_v47 = vmin.f32 %v642_v18, %v1946_v2  ;;  %v669_v10 = vmin.f32 %v668_v19, %v1948_v52  ;;  %v1959_v8 = vshrl.u32 %v689_v29, 7 }
 0x1e4   :  { %v656_v15 = vmin.f32 %v655_v48, %v1950_v11  ;;  %v682_v55 = vmin.f32 %v681_v49, %v1952_v46 }
 0x1e5   :  { %v644_v60 = vrot.slane %v643_v47, 4  ;;  %v670_v3 = vrot.slane %v669_v10, 4  ;;  %v1962_v59 = vadd.s32 8, %v1959_v8 }
 0x1e6   :  { %v657_v17 = vrot.slane %v656_v15, 4  ;;  %v683_v28 = vrot.slane %v682_v55, 4 }
 0x1e7   :  { %v645_v54 = vmin.f32 %v643_v47, %v644_v60  ;;  %v671_v16 = vmin.f32 %v669_v10, %v670_v3  ;;  %v1965_v60 = vadd.s32 16, %v1959_v8  ;;  %v1968_v10 = vadd.s32 24, %v1959_v8 }
 0x1e8   :  { %v658_v58 = vmin.f32 %v656_v15, %v657_v17  ;;  %v684_v51 = vmin.f32 %v682_v55, %v683_v28  ;;  %v1971_v15 = vadd.s32 32, %v1959_v8 }
 0x1e9   :  { %v646_v62 = vrot.slane %v645_v54, 2  ;;  %v672_v50 = vrot.slane %v671_v16, 2 }
 0x1ea   :  { %v659_v18 = vrot.slane %v658_v58, 2  ;;  %v685_v19 = vrot.slane %v684_v51, 2 }
 0x1eb   :  { %v647_v39 = vmin.f32 %v645_v54, %v646_v62  ;;  %v673_v48 = vmin.f32 %v671_v16, %v672_v50  ;;  %v1974_v54 = vadd.s32 40, %v1959_v8 }
 0x1ec   :  { %v660_v33 = vmin.f32 %v658_v58, %v659_v18  ;;  %v686_v49 = vmin.f32 %v684_v51, %v685_v19  ;;  %v1977_v58 = vadd.s32 48, %v1959_v8 }
 0x1ed   :  { %v648_v37 = vrot.slane %v647_v39, 1  ;;  %v674_v41 = vrot.slane %v673_v48, 1 }
 0x1ee   :  { %v661_v55 = vrot.slane %v660_v33, 1  ;;  %v687_v3 = vrot.slane %v686_v49, 1 }
 0x1ef   :  { %v649_v47 = vmin.f32 %v647_v39, %v648_v37  ;;  %v1979_v62 = vmin.f32 %v673_v48, %v674_v41  ;;  %v1990_v37 = vadd.s32 56, %v1959_v8 }
 0x1f1   :  { %vm698_vm3 = vcmp.le.f32.partialorder %v1862_v30, %v649_v47  ;;  %vm702_vm4 = vcmp.le.f32.partialorder %v1866_v34, %v649_v47  ;;  %vm706_vm5 = vcmp.le.f32.partialorder %v1886_v4, %v649_v47  ;;  %vm710_vm6 = vcmp.le.f32.partialorder %v1898_v21, %v649_v47 }
 0x1f2   :  { %vm714_vm7 = vcmp.le.f32.partialorder %v1910_v56, %v649_v47  ;;  %vm718_vm8 = vcmp.le.f32.partialorder %v1922_v20, %v649_v47  ;;  %vm722_vm9 = vcmp.le.f32.partialorder %v1934_v12, %v649_v47  ;;  %vm726_vm10 = vcmp.le.f32.partialorder %v1946_v2, %v649_v47 }
 0x1f3   :  { %v730_v39 = vsel %vm698_vm3, %v1959_v8, 64  ;;  %v734_v41 = vsel %vm702_vm4, %v1962_v59, 64  ;;  %v1994_v30 = vmin.f32 %v660_v33, %v661_v55  ;;  %v738_v34 = vsel %vm706_vm5, %v1965_v60, 64 }
 0x1f4   :  { %v742_v4 = vsel %vm710_vm6, %v1968_v10, 64  ;;  %v746_v21 = vsel %vm714_vm7, %v1971_v15, 64  ;;  %v1999_v56 = vmin.f32 %v686_v49, %v687_v3  ;;  %vm762_vm11 = vcmp.lt.s32.totalorder %v730_v39, %v734_v41 }
 0x1f5   :  { %vm700_vm12 = vcmp.le.f32.partialorder %v1864_v31, %v1979_v62  ;;  %vm704_vm13 = vcmp.le.f32.partialorder %v1868_v35, %v1979_v62  ;;  %vm708_vm14 = vcmp.le.f32.partialorder %v1888_v5, %v1979_v62  ;;  %v763_v33 = vsel %vm762_vm11, %v730_v39, %v734_v41 }
 0x1f6   :  { %vm712_vm15 = vcmp.le.f32.partialorder %v1900_v22, %v1979_v62  ;;  %vm716_vm0 = vcmp.le.f32.partialorder %v1912_v63, %v1979_v62  ;;  %vm720_vm1 = vcmp.le.f32.partialorder %v1924_v25, %v1979_v62  ;;  %vm764_vm3 = vcmp.lt.s32.totalorder %v763_v33, %v738_v34 }
 0x1f7   :  { %vm724_vm4 = vcmp.le.f32.partialorder %v1936_v13, %v1979_v62  ;;  %vm728_vm5 = vcmp.le.f32.partialorder %v1948_v52, %v1979_v62  ;;  %v732_v31 = vsel %vm700_vm12, %v1959_v8, 64  ;;  %v750_v35 = vsel %vm718_vm8, %v1974_v54, 64 }
 0x1f8   :  { %v754_v5 = vsel %vm722_vm9, %v1977_v58, 64  ;;  %v765_v22 = vsel %vm764_vm3, %v763_v33, %v738_v34  ;;  %v736_v63 = vsel %vm704_vm13, %v1962_v59, 64  ;;  %v758_v17 = vsel %vm726_vm10, %v1990_v37, 64 }
 0x1f9   :  { %vm766_vm6 = vcmp.lt.s32.totalorder %v765_v22, %v742_v4  ;;  %v740_v28 = vsel %vm708_vm14, %v1965_v60, 64  ;;  %v744_v16 = vsel %vm712_vm15, %v1968_v10, 64  ;;  %v748_v20 = vsel %vm716_vm0, %v1971_v15, 64 }
 0x1fa   :  { %v767_v51 = vsel %vm766_vm6, %v765_v22, %v742_v4  ;;  %vm808_vm7 = vcmp.lt.s32.totalorder %v732_v31, %v736_v63  ;;  %vm699_vm8 = vcmp.le.f32.partialorder %v1870_v42, %v1994_v30  ;;  %vm703_vm11 = vcmp.le.f32.partialorder %v1874_v44, %v1994_v30 }
 0x1fb   :  { %vm768_vm9 = vcmp.lt.s32.totalorder %v767_v51, %v746_v21  ;;  %v809_v12 = vsel %vm808_vm7, %v732_v31, %v736_v63  ;;  %vm707_vm10 = vcmp.le.f32.partialorder %v1890_v6, %v1994_v30  ;;  %vm711_vm13 = vcmp.le.f32.partialorder %v1902_v23, %v1994_v30 }
 0x1fc   :  { %v769_v2 = vsel %vm768_vm9, %v767_v51, %v746_v21  ;;  %vm810_vm12 = vcmp.lt.s32.totalorder %v809_v12, %v740_v28  ;;  %vm715_vm14 = vcmp.le.f32.partialorder %v1914_v0, %v1994_v30  ;;  %vm719_vm0 = vcmp.le.f32.partialorder %v1926_v26, %v1994_v30 }
 0x1fd   :  { %vm770_vm15 = vcmp.lt.s32.totalorder %v769_v2, %v750_v35  ;;  %v811_v50 = vsel %vm810_vm12, %v809_v12, %v740_v28  ;;  %vm723_vm3 = vcmp.le.f32.partialorder %v1938_v14, %v1994_v30  ;;  %v752_v19 = vsel %vm720_vm1, %v1974_v54, 64 }
 0x1fe   :  { %v771_v18 = vsel %vm770_vm15, %v769_v2, %v750_v35  ;;  %vm812_vm6 = vcmp.lt.s32.totalorder %v811_v50, %v744_v16  ;;  %vm727_vm7 = vcmp.le.f32.partialorder %v1950_v11, %v1994_v30  ;;  %v731_v49 = vsel %vm699_vm8, %v1959_v8, 64 }
 0x1ff   :  { %vm772_vm9 = vcmp.lt.s32.totalorder %v771_v18, %v754_v5  ;;  %v813_v48 = vsel %vm812_vm6, %v811_v50, %v744_v16  ;;  %v735_v47 = vsel %vm703_vm11, %v1962_v59, 64  ;;  %v756_v25 = vsel %vm724_vm4, %v1977_v58, 64 }
 0x200   :  { %v773_v55 = vsel %vm772_vm9, %v771_v18, %v754_v5  ;;  %v760_v3 = vsel %vm728_vm5, %v1990_v37, 64  ;;  %vm814_vm1 = vcmp.lt.s32.totalorder %v813_v48, %v748_v20  ;;  %v739_v44 = vsel %vm707_vm10, %v1965_v60, 64 }
 0x201   :  { %vm774_vm12 = vcmp.lt.s32.totalorder %v773_v55, %v758_v17  ;;  %v815_v42 = vsel %vm814_vm1, %v813_v48, %v748_v20  ;;  %v743_v39 = vsel %vm711_vm13, %v1968_v10, 64  ;;  %v747_v52 = vsel %vm715_vm14, %v1971_v15, 64 }
 0x202   :  { %v775_v13 = vsel %vm774_vm12, %v773_v55, %v758_v17  ;;  %vm816_vm4 = vcmp.lt.s32.totalorder %v815_v42, %v752_v19  ;;  %vm785_vm5 = vcmp.lt.s32.totalorder %v731_v49, %v735_v47  ;;  %vm701_vm8 = vcmp.le.f32.partialorder %v1872_v43, %v1999_v56 }
 0x203   :  { %v776_v62 = vrot.slane %v775_v13, 4  ;;  %v817_v41 = vsel %vm816_vm4, %v815_v42, %v752_v19  ;;  %v786_v34 = vsel %vm785_vm5, %v731_v49, %v735_v47  ;;  %vm705_vm15 = vcmp.le.f32.partialorder %v1876_v45, %v1999_v56 }
 0x204   :  { %vm818_vm11 = vcmp.lt.s32.totalorder %v817_v41, %v756_v25  ;;  %vm787_vm10 = vcmp.lt.s32.totalorder %v786_v34, %v739_v44  ;;  %vm709_vm13 = vcmp.le.f32.partialorder %v1892_v7, %v1999_v56  ;;  %vm713_vm14 = vcmp.le.f32.partialorder %v1904_v24, %v1999_v56 }
 0x205   :  { %vm777_vm6 = vcmp.lt.s32.totalorder %v775_v13, %v776_v62  ;;  %v819_v6 = vsel %vm818_vm11, %v817_v41, %v756_v25  ;;  %v788_v23 = vsel %vm787_vm10, %v786_v34, %v739_v44  ;;  %vm717_vm12 = vcmp.le.f32.partialorder %v1916_v1, %v1999_v56 }
 0x206   :  { %v778_v0 = vsel %vm777_vm6, %v775_v13, %v776_v62  ;;  %vm820_vm9 = vcmp.lt.s32.totalorder %v819_v6, %v760_v3  ;;  %vm789_vm1 = vcmp.lt.s32.totalorder %v788_v23, %v743_v39  ;;  %vm721_vm4 = vcmp.le.f32.partialorder %v1928_v27, %v1999_v56 }
 0x207   :  { %v779_v4 = vrot.slane %v778_v0, 2  ;;  %v821_v21 = vsel %vm820_vm9, %v819_v6, %v760_v3  ;;  %v790_v33 = vsel %vm789_vm1, %v788_v23, %v743_v39  ;;  %vm725_vm11 = vcmp.le.f32.partialorder %v1940_v9, %v1999_v56 }
 0x208   :  { %v822_v31 = vrot.slane %v821_v21, 4  ;;  %vm791_vm5 = vcmp.lt.s32.totalorder %v790_v33, %v747_v52  ;;  %vm729_vm10 = vcmp.le.f32.partialorder %v1952_v46, %v1999_v56  ;;  %v751_v35 = vsel %vm719_vm0, %v1974_v54, 64 }
 0x209   :  { %v792_v5 = vsel %vm791_vm5, %v790_v33, %v747_v52  ;;  %vm780_vm6 = vcmp.lt.s32.totalorder %v778_v0, %v779_v4  ;;  %v755_v22 = vsel %vm723_vm3, %v1977_v58, 64  ;;  %v733_v17 = vsel %vm701_vm8, %v1959_v8, 64 }
 0x20a   :  { %vm793_vm9 = vcmp.lt.s32.totalorder %v792_v5, %v751_v35  ;;  %vm823_vm1 = vcmp.lt.s32.totalorder %v821_v21, %v822_v31  ;;  %v737_v26 = vsel %vm705_vm15, %v1962_v59, 64  ;;  %v781_v28 = vsel %vm780_vm6, %v778_v0, %v779_v4 }
 0x20b   :  { %v794_v63 = vsel %vm793_vm9, %v792_v5, %v751_v35  ;;  %v759_v14 = vsel %vm727_vm7, %v1990_v37, 64  ;;  %v824_v51 = vsel %vm823_vm1, %v821_v21, %v822_v31  ;;  %vm831_vm5 = vcmp.lt.s32.totalorder %v733_v17, %v737_v26 }
 0x20c   :  { %vm795_vm0 = vcmp.lt.s32.totalorder %v794_v63, %v755_v22  ;;  %v741_v43 = vsel %vm709_vm13, %v1965_v60, 64  ;;  %v832_v12 = vsel %vm831_vm5, %v733_v17, %v737_v26  ;;  %v782_v45 = vrot.slane %v781_v28, 1 }
 0x20d   :  { %v796_v16 = vsel %vm795_vm0, %v794_v63, %v755_v22  ;;  %vm833_vm8 = vcmp.lt.s32.totalorder %v832_v12, %v741_v43  ;;  %v825_v50 = vrot.slane %v824_v51, 2  ;;  %v745_v11 = vsel %vm713_vm14, %v1968_v10, 64 }
 0x20e   :  { %vm797_vm3 = vcmp.lt.s32.totalorder %v796_v16, %v759_v14  ;;  %v834_v30 = vsel %vm833_vm8, %v832_v12, %v741_v43  ;;  %v749_v7 = vsel %vm717_vm12, %v1971_v15, 64  ;;  %vm783_vm13 = vcmp.lt.s32.totalorder %v781_v28, %v782_v45 }
 0x20f   :  { %v798_v20 = vsel %vm797_vm3, %v796_v16, %v759_v14  ;;  %vm835_vm15 = vcmp.lt.s32.totalorder %v834_v30, %v745_v11  ;;  %vm826_vm9 = vcmp.lt.s32.totalorder %v824_v51, %v825_v50  ;;  %v753_v24 = vsel %vm721_vm4, %v1974_v54, 64 }
 0x210   :  { %v799_v2 = vrot.slane %v798_v20, 4  ;;  %v836_v19 = vsel %vm835_vm15, %v834_v30, %v745_v11  ;;  %v2131_v47 = vsel %vm783_vm13, %v781_v28, %v782_v45  ;;  %v757_v1 = vsel %vm725_vm11, %v1977_v58, 64 }
 0x211   :  { %vm837_vm6 = vcmp.lt.s32.totalorder %v836_v19, %v749_v7  ;;  %v827_v3 = vsel %vm826_vm9, %v824_v51, %v825_v50  ;;  %v761_v27 = vsel %vm729_vm10, %v1990_v37, 64  ;;  %v1622_v39 = vmov 1966171168  }
 0x212   :  { %vm800_vm7 = vcmp.lt.s32.totalorder %v798_v20, %v799_v2  ;;  %v838_v49 = vsel %vm837_vm6, %v836_v19, %v749_v7  ;;  %v857_v13 = vunpack.c.l.s4 %v1622_v39  ;;  %vm883_vm3 = vcmp.eq.s32.totalorder %v1959_v8, %v2131_v47 }
 0x213   :  { %v801_v18 = vsel %vm800_vm7, %v798_v20, %v799_v2  ;;  %vm839_vm1 = vcmp.lt.s32.totalorder %v838_v49, %v753_v24  ;;  %v828_v52 = vrot.slane %v827_v3, 1  ;;  %vm887_vm11 = vcmp.eq.s32.totalorder %v1962_v59, %v2131_v47 }
 0x214   :  { %v802_v48 = vrot.slane %v801_v18, 2  ;;  %v840_v25 = vsel %vm839_vm1, %v838_v49, %v753_v24  ;;  %v1623_v46 = vmov 1.0|1.0   ;;  %vm1566_vm6 = vmpackc.low %vm887_vm11, %vm883_vm3  ;;  %v858_v56 = vunpack.c.0.s8 %v857_v13  ;;  %v2327_v13 = vld [vmem:[#allocation3_spill] sm:$0xff] }
 0x215   :  { %vm841_vm12 = vcmp.lt.s32.totalorder %v840_v25, %v757_v1  ;;  %vm829_vm9 = vcmp.lt.s32.totalorder %v827_v3, %v828_v52  ;;  %vm891_vm1 = vcmp.eq.s32.totalorder %v1965_v60, %v2131_v47  ;;  %v2324_v63 = vmov 0.0  }
 0x216   :  { %vm803_vm14 = vcmp.lt.s32.totalorder %v801_v18, %v802_v48  ;;  %v842_v44 = vsel %vm841_vm12, %v840_v25, %v757_v1  ;;  %vm895_vm12 = vcmp.eq.s32.totalorder %v1968_v10, %v2131_v47  ;;  %v2162_v0 = vsel %vm829_vm9, %v827_v3, %v828_v52  ;;  %v2325_v3 = vld [vmem:[#allocation8_spill] sm:$0xff] }
 0x217   :  { %v804_v55 = vsel %vm803_vm14, %v801_v18, %v802_v48  ;;  %vm843_vm0 = vcmp.lt.s32.totalorder %v842_v44, %v761_v27  ;;  %vm1570_vm11 = vmpackc.low %vm895_vm12, %vm891_vm1  ;;  %v2170_v21 = vsub.s32 %v858_v56, %v1959_v8  ;;  %vm907_vm12 = vcmp.eq.s32.totalorder %v1977_v58, %v2131_v47 }
 0x218   :  { %v805_v42 = vrot.slane %v804_v55, 1  ;;  %v844_v62 = vsel %vm843_vm0, %v842_v44, %v761_v27 }
 0x219   :  { %v845_v34 = vrot.slane %v844_v62, 4 }
 0x21a   :  { %vm806_vm4 = vcmp.lt.s32.totalorder %v804_v55, %v805_v42 }
 0x21b   :  { %v807_v9 = vsel %vm806_vm4, %v804_v55, %v805_v42  ;;  %vm846_vm13 = vcmp.lt.s32.totalorder %v844_v62, %v845_v34 }
 0x21c   :  { %v854_v41 = vcombine.low %v2131_v47, %v807_v9  ;;  %vm884_vm5 = vcmp.eq.s32.totalorder %v1959_v8, %v807_v9  ;;  %vm888_vm10 = vcmp.eq.s32.totalorder %v1962_v59, %v807_v9  ;;  %vm892_vm7 = vcmp.eq.s32.totalorder %v1965_v60, %v807_v9 }
 0x21d   :  { %vm1564_vm8 = vmpackc.low %vm888_vm10, %vm884_vm5  ;;  %vm896_vm15 = vcmp.eq.s32.totalorder %v1968_v10, %v807_v9  ;;  %v847_v6 = vsel %vm846_vm13, %v844_v62, %v845_v34  ;;  %vm900_vm4 = vcmp.eq.s32.totalorder %v1971_v15, %v807_v9  ;;  %vm904_vm0 = vcmp.eq.s32.totalorder %v1974_v54, %v807_v9  ;;  %v2328_v62 = vld [vmem:[#allocation2_spill] sm:$0xff] }
 0x21e   :  { %1565 = vmatprep.subr.msk.bf16.mxu0 %vm1564_vm8, %v1623_v46  ;;  %vm1568_vm14 = vmpackc.low %vm896_vm15, %vm892_vm7  ;;  %v848_v23 = vrot.slane %v847_v6, 2  ;;  %vm899_vm10 = vcmp.eq.s32.totalorder %v1971_v15, %v2131_v47  ;;  %vm903_vm8 = vcmp.eq.s32.totalorder %v1974_v54, %v2131_v47  ;;  %vm908_vm7 = vcmp.eq.s32.totalorder %v1977_v58, %v807_v9 }
 0x21f   :  { %1567 = vmatpush1.bf16.msk.msra.mxu0 %vm1566_vm6, %v1623_v46  ;;  %vm1572_vm5 = vmpackc.low %vm904_vm0, %vm900_vm4  ;;  %vm912_vm15 = vcmp.eq.s32.totalorder %v1990_v37, %v807_v9  ;;  %vm885_vm13 = vcmp.eq.s32.totalorder %v1959_v8, %v2162_v0  ;;  %vm889_vm6 = vcmp.eq.s32.totalorder %v1962_v59, %v2162_v0  ;;  %vm911_vm4 = vcmp.eq.s32.totalorder %v1990_v37, %v2131_v47 }
 0x220   :  { %1569 = vmatprep.subr.msk.bf16.mxu0 %vm1568_vm14, %v1623_v46  ;;  %vm849_vm3 = vcmp.lt.s32.totalorder %v847_v6, %v848_v23  ;;  %vm1574_vm14 = vmpackc.low %vm903_vm8, %vm899_vm10  ;;  %v862_v35 = vrot.slane %v854_v41, %v2170_v21 }
 0x221   :  { %v850_v4 = vsel %vm849_vm3, %v847_v6, %v848_v23  ;;  %vm1576_vm1 = vmpackc.low %vm912_vm15, %vm908_vm7  ;;  %v2329_v6 = vld [vmem:[#allocation4_spill] sm:$0xff] }
 0x222   :  { %v851_v33 = vrot.slane %v850_v4, 1  ;;  %vm1578_vm7 = vmpackc.low %vm911_vm4, %vm907_vm12  ;;  %vm2206_vm12 = vcmp.lt.s32.totalorder %v689_v29, 512  ;;  %v980_v29 = vld [vmem:[%s2297_s4 + $0x8] sm:$0xff] }
 0x223   :  { %1571 = vmatpush1.bf16.msk.msra.mxu0 %vm1570_vm11, %v1623_v46  ;;  %vm1582_vm11 = vmpackc.low %vm889_vm6, %vm885_vm13  ;;  %vm897_vm13 = vcmp.eq.s32.totalorder %v1968_v10, %v2162_v0  ;;  %vm983_vm6 = vcmask 523264  }
 0x224   :  { %1573 = vmatprep.subr.msk.bf16.mxu0 %vm1572_vm5, %v1623_v46  ;;  %vm852_vm9 = vcmp.lt.s32.totalorder %v850_v4, %v851_v33 }
 0x225   :  { %v853_v31 = vsel %vm852_vm9, %v850_v4, %v851_v33  ;;  %vm893_vm9 = vcmp.eq.s32.totalorder %v1965_v60, %v2162_v0 }
 0x226   :  { %v855_v5 = vcombine.low %v2162_v0, %v853_v31  ;;  %vm886_vm0 = vcmp.eq.s32.totalorder %v1959_v8, %v853_v31  ;;  %vm890_vm3 = vcmp.eq.s32.totalorder %v1962_v59, %v853_v31  ;;  %vm894_vm5 = vcmp.eq.s32.totalorder %v1965_v60, %v853_v31  ;;  %v979_v59 = vld [vmem:[%s2297_s4] sm:$0xff]  ;;  %vm1586_vm4 = vmpackc.low %vm897_vm13, %vm893_vm9 }
 0x227   :  { %1575 = vmatpush1.bf16.msk.msra.mxu0 %vm1574_vm14, %v1623_v46  ;;  %vm1580_vm10 = vmpackc.low %vm890_vm3, %vm886_vm0  ;;  %vm898_vm8 = vcmp.eq.s32.totalorder %v1968_v10, %v853_v31  ;;  %vm902_vm14 = vcmp.eq.s32.totalorder %v1971_v15, %v853_v31  ;;  %vm901_vm3 = vcmp.eq.s32.totalorder %v1971_v15, %v2162_v0  ;;  %vm913_vm9 = vcmp.eq.s32.totalorder %v1990_v37, %v2162_v0  ;;  %v981_v15 = vld [vmem:[%s2297_s4 + $0x10] sm:$0xff] }
 0x228   :  { %1577 = vmatprep.subr.msk.bf16.mxu0 %vm1576_vm1, %v1623_v46  ;;  %1581 = vmatprep.subr.msk.bf16.mxu1 %vm1580_vm10, %v1623_v46  ;;  %v869_v22 = vrot.slane %v855_v5, %v2170_v21  ;;  %vm1584_vm15 = vmpackc.low %vm898_vm8, %vm894_vm5  ;;  %vm906_vm1 = vcmp.eq.s32.totalorder %v1974_v54, %v853_v31  ;;  %vm910_vm5 = vcmp.eq.s32.totalorder %v1977_v58, %v853_v31 }
 0x229   :  { %1583 = vmatpush1.bf16.msk.msra.mxu1 %vm1582_vm11, %v1623_v46  ;;  %vm1588_vm0 = vmpackc.low %vm906_vm1, %vm902_vm14  ;;  %vm905_vm11 = vcmp.eq.s32.totalorder %v1974_v54, %v2162_v0  ;;  %vm914_vm10 = vcmp.eq.s32.totalorder %v1990_v37, %v853_v31  ;;  %v982_v54 = vld [vmem:[%s2297_s4 + $0x18] sm:$0xff] }
 0x22a   :  { %1585 = vmatprep.subr.msk.bf16.mxu1 %vm1584_vm15, %v1623_v46  ;;  %v870_v8 = vcombine.low %v862_v35, %v869_v22  ;;  %vm1590_vm8 = vmpackc.low %vm905_vm11, %vm901_vm3  ;;  %vm909_vm15 = vcmp.eq.s32.totalorder %v1977_v58, %v2162_v0 }
 0x22b   :  { %1579 = vmatpush1.bf16.msk.msra.mxu0 %vm1578_vm7, %v1623_v46  ;;  %vm1592_vm7 = vmpackc.low %vm914_vm10, %vm910_vm5 }
 0x22c   :  { %v877_v10 = vrot.slane %v870_v8, %v2170_v21  ;;  %vm1594_vm13 = vmpackc.low %vm913_vm9, %vm909_vm15 }
 0x22d   :  { %1587 = vmatpush1.bf16.msk.msra.mxu1 %vm1586_vm4, %v1623_v46 }
 0x22e   :  { %1522 = vmatmul.mubr.msk.f32.vlgmr.msra.gmra.mrb[24].mxu0 %vm983_vm6, %v979_v59  ;;  %1589 = vmatprep.subr.msk.bf16.mxu1 %vm1588_vm0, %v1623_v46  ;;  %882 = vst.msk [vmem:[%s2298_s9] sm:$0xf] %vm2206_vm12, %v877_v10 }
 0x22f   :  { %1066 = vmatprep.mubr.f32.mxu0 %v2324_v63 }
 0x231   :  { %1591 = vmatpush1.bf16.msk.msra.mxu1 %vm1590_vm8, %v1623_v46 }
 0x232   :  { %1523 = vmatmul.mubr.msk.f32.gmra.mrb[26].mxu0 %vm983_vm6, %v980_v29  ;;  %1593 = vmatprep.subr.msk.bf16.mxu1 %vm1592_vm7, %v1623_v46 }
 0x233   :  { %1072 = vmatprep.mubr.f32.mxu0 %v2324_v63 }
 0x235   :  { %1595 = vmatpush1.bf16.msk.msra.mxu1 %vm1594_vm13, %v1623_v46 }
 0x236   :  { %1524 = vmatmul.mubr.msk.f32.gmra.mrb[28].mxu0 %vm983_vm6, %v981_v15 }
 0x237   :  { %1078 = vmatprep.mubr.f32.mxu0 %v2324_v63 }
 0x238   :  { %1542 = vmatmul.mubr.msk.f32.vlgmr.msra.gmra.mrb[24].mxu1 %vm983_vm6, %v979_v59 }
 0x239   :  { %1155 = vmatprep.mubr.f32.mxu1 %v2324_v63 }
 0x23a   :  { %1525 = vmatmul.mubr.msk.f32.gmra.mrb[30].mxu0 %vm983_vm6, %v982_v54 }
 0x23b   :  { %1346 = vmatprep.mubr.f32.mxu0 %v2324_v63 }
 0x23c   :  { %1543 = vmatmul.mubr.msk.f32.gmra.mrb[26].mxu1 %vm983_vm6, %v980_v29 }
 0x23d   :  { %1161 = vmatprep.mubr.f32.mxu1 %v2324_v63 }
 0x240   :  { %1544 = vmatmul.mubr.msk.f32.gmra.mrb[28].mxu1 %vm983_vm6, %v981_v15 }
 0x241   :  { %1167 = vmatprep.mubr.f32.mxu1 %v2324_v63 }
 0x244   :  { %1545 = vmatmul.mubr.msk.f32.gmra.mrb[30].mxu1 %vm983_vm6, %v982_v54 }
 0x245   :  { %1417 = vmatprep.mubr.f32.mxu1 %v2324_v63  ;;  %v2330_v63 = vld [vmem:[#allocation10_spill] sm:$0xff] }
 0x301   :  { %v1062_v58 = vpop.f32.mrb[24].mxu0 }
 0x302   :  { %v1064_v37 = vpop.f32.mrb[25].mxu0  ;;  %v1174_v17 = vsub.f32 %v1062_v58, %v1770_v40 }
 0x303   :  { %v1175_v26 = vsub.f32 %v1064_v37, %v1762_v36 }
 0x304   :  { %v1190_v12 = vmul.f32 %v1174_v17, %v1174_v17 }
 0x305   :  { %v1068_v28 = vpop.f32.mrb[26].mxu0  ;;  %v1191_v2 = vmul.f32 %v1175_v26, %v1175_v26 }
 0x306   :  { %v1178_v14 = vsub.f32 %v1068_v28, %v1758_v32  ;;  %v1598_v16 = vpack.c.bf16 %v1068_v28, %v1062_v58  ;;  %v1070_v51 = vpop.f32.mrb[27].mxu0 }
 0x307   :  { %v1179_v20 = vsub.f32 %v1070_v51, %v1766_v38  ;;  %v1596_v43 = vpack.c.bf16 %v1070_v51, %v1064_v37  ;;  %v2331_v37 = vld [vmem:[#allocation7_spill] sm:$0xff] }
 0x308   :  { %v1194_v45 = vmul.f32 %v1178_v14, %v1178_v14 }
 0x309   :  { %v1195_v50 = vmul.f32 %v1179_v20, %v1179_v20  ;;  %v1074_v11 = vpop.f32.mrb[28].mxu0  ;;  %1597 = vmatprep.subr.bf16.mxu0 %v1596_v43 }
 0x30a   :  { %v1206_v30 = vadd.f32 %v1194_v45, %v1190_v12  ;;  %v1182_v18 = vsub.f32 %v1074_v11, %v1794_v61  ;;  %v1076_v40 = vpop.f32.mrb[29].mxu0  ;;  %1599 = vmatpush1.bf16.msra.mxu0 %v1598_v16  ;;  %v2326_v61 = vld [vmem:[#allocation5_spill] sm:$0xff]  ;;  %v2332_v45 = vld [vmem:[#allocation6_spill] sm:$0xff] }
 0x30b   :  { %v1215_v36 = vadd.f32 %v1195_v50, %v1191_v2  ;;  %v1183_v7 = vsub.f32 %v1076_v40, %v1786_v57  ;;  %v1151_v19 = vpop.f32.mrb[24].mxu1 }
 0x30c   :  { %v1198_v32 = vmul.f32 %v1182_v18, %v1182_v18  ;;  %v1153_v38 = vpop.f32.mrb[25].mxu1  ;;  %v1176_v44 = vsub.f32 %v1151_v19, %v2326_v61 }
 0x30d   :  { %v1199_v48 = vmul.f32 %v1183_v7, %v1183_v7  ;;  %v1080_v24 = vpop.f32.mrb[30].mxu0  ;;  %v1177_v52 = vsub.f32 %v1153_v38, %v2327_v13 }
 0x30e   :  { %v1207_v49 = vadd.f32 %v1206_v30, %v1198_v32  ;;  %v1186_v47 = vsub.f32 %v1080_v24, %v1782_v53  ;;  %v1602_v55 = vpack.c.bf16 %v1080_v24, %v1074_v11  ;;  %v1082_v1 = vpop.f32.mrb[31].mxu0  ;;  %v1272_v53 = vld [vmem:[%s2299_s6] sm:$0xf]  ;;  %v1192_v33 = vmul.f32 %v1176_v44, %v1176_v44 }
 0x30f   :  { %v1216_v25 = vadd.f32 %v1215_v36, %v1199_v48  ;;  %v1187_v42 = vsub.f32 %v1082_v1, %v2325_v3  ;;  %v1600_v27 = vpack.c.bf16 %v1082_v1, %v1076_v40  ;;  %v1157_v57 = vpop.f32.mrb[26].mxu1  ;;  %v1193_v5 = vmul.f32 %v1177_v52, %v1177_v52  ;;  %v2333_v40 = vld [vmem:[#allocation9_spill] sm:$0xff] }
 0x310   :  { %v1202_v39 = vmul.f32 %v1186_v47, %v1186_v47  ;;  %v1180_v41 = vsub.f32 %v1157_v57, %v2328_v62  ;;  %v1606_v34 = vpack.c.bf16 %v1157_v57, %v1151_v19  ;;  %v1159_v46 = vpop.f32.mrb[27].mxu1 }
 0x311   :  { %v1203_v9 = vmul.f32 %v1187_v42, %v1187_v42  ;;  %1601 = vmatprep.subr.bf16.mxu0 %v1600_v27  ;;  %v1181_v23 = vsub.f32 %v1159_v46, %v2329_v6  ;;  %v1604_v0 = vpack.c.bf16 %v1159_v46, %v1153_v38 }
 0x312   :  { %v1208_v56 = vadd.f32 %v1207_v49, %v1202_v39  ;;  %1603 = vmatpush1.bf16.msra.mxu0 %v1602_v55  ;;  %v1196_v31 = vmul.f32 %v1180_v41, %v1180_v41 }
 0x313   :  { %v1217_v4 = vadd.f32 %v1216_v25, %v1203_v9  ;;  %v1197_v22 = vmul.f32 %v1181_v23, %v1181_v23  ;;  %v1163_v59 = vpop.f32.mrb[28].mxu1  ;;  %1605 = vmatprep.subr.bf16.mxu1 %v1604_v0 }
 0x314   :  { %v1209_v35 = vrot.slane %v1208_v56, 4  ;;  %v1224_v10 = vadd.f32 %v1196_v31, %v1192_v33  ;;  %v1184_v29 = vsub.f32 %v1163_v59, %v2330_v63  ;;  %v1165_v15 = vpop.f32.mrb[29].mxu1  ;;  %1607 = vmatpush1.bf16.msra.mxu1 %v1606_v34 }
 0x315   :  { %v1218_v8 = vrot.slane %v1217_v4, 4  ;;  %1546 = vmatmul.mubr.msk.f32.vlgmr.msra.gmra.mrb[32].mxu0 %vm274_vm2, %v1272_v53  ;;  %v1233_v58 = vadd.f32 %v1197_v22, %v1193_v5  ;;  %v1185_v17 = vsub.f32 %v1165_v15, %v2331_v37 }
 0x316   :  { %v1210_v54 = vadd.f32 %v1209_v35, %v1208_v56  ;;  %v1200_v28 = vmul.f32 %v1184_v29, %v1184_v29 }
 0x317   :  { %v1219_v26 = vadd.f32 %v1218_v8, %v1217_v4  ;;  %v1201_v16 = vmul.f32 %v1185_v17, %v1185_v17  ;;  %v1169_v51 = vpop.f32.mrb[30].mxu1 }
 0x318   :  { %v1211_v14 = vrot.slane %v1210_v54, 2  ;;  %v1225_v43 = vadd.f32 %v1224_v10, %v1200_v28  ;;  %v1188_v2 = vsub.f32 %v1169_v51, %v2332_v45  ;;  %v1610_v50 = vpack.c.bf16 %v1169_v51, %v1163_v59  ;;  %v1171_v11 = vpop.f32.mrb[31].mxu1 }
 0x319   :  { %v1220_v20 = vrot.slane %v1219_v26, 2  ;;  %v1234_v30 = vadd.f32 %v1233_v58, %v1201_v16  ;;  %v1189_v36 = vsub.f32 %v1171_v11, %v2333_v40  ;;  %v1608_v7 = vpack.c.bf16 %v1171_v11, %v1165_v15 }
 0x31a   :  { %v1212_v12 = vadd.f32 %v1211_v14, %v1210_v54  ;;  %v1204_v19 = vmul.f32 %v1188_v2, %v1188_v2 }
 0x31b   :  { %v1221_v18 = vadd.f32 %v1220_v20, %v1219_v26  ;;  %v1205_v24 = vmul.f32 %v1189_v36, %v1189_v36  ;;  %1609 = vmatprep.subr.bf16.mxu1 %v1608_v7 }
 0x31c   :  { %v1213_v32 = vrot.slane %v1212_v12, 1  ;;  %v1226_v49 = vadd.f32 %v1225_v43, %v1204_v19  ;;  %1611 = vmatpush1.bf16.msra.mxu1 %v1610_v50 }
 0x31d   :  { %v1222_v48 = vrot.slane %v1221_v18, 1  ;;  %v1235_v55 = vadd.f32 %v1234_v30, %v1205_v24 }
 0x31e   :  { %v1214_v38 = vadd.f32 %v1213_v32, %v1212_v12  ;;  %v1227_v1 = vrot.slane %v1226_v49, 4 }
 0x31f   :  { %v1223_v47 = vadd.f32 %v1222_v48, %v1221_v18  ;;  %v1236_v3 = vrot.slane %v1235_v55, 4  ;;  %1547 = vmatmul.mubr.msk.f32.vlgmr.msra.gmra.mrb[32].mxu1 %vm274_vm2, %v1272_v53  ;;  %v1277_v53 = vpop.permute.xlu0 %1276 }
 0x320   :  { %v1228_v42 = vadd.f32 %v1227_v1, %v1226_v49 }
 0x321   :  { %v1246_v25 = vcombine.low %v1214_v38, %v1223_v47  ;;  %v1237_v27 = vadd.f32 %v1236_v3, %v1235_v55 }
 0x322   :  { %v1229_v61 = vrot.slane %v1228_v42, 2 }
 0x323   :  { %v1238_v44 = vrot.slane %v1237_v27, 2  ;;  %v1254_v41 = vrot.slane %v1246_v25, %v2170_v21 }
 0x324   :  { %v1230_v39 = vadd.f32 %v1229_v61, %v1228_v42 }
 0x325   :  { %v1239_v13 = vadd.f32 %v1238_v44, %v1237_v27 }
 0x326   :  { %v1231_v52 = vrot.slane %v1230_v39, 1 }
 0x327   :  { %v1240_v57 = vrot.slane %v1239_v13, 1 }
 0x328   :  { %v1232_v9 = vadd.f32 %v1231_v52, %v1230_v39 }
 0x329   :  { %v1241_v62 = vadd.f32 %v1240_v57, %v1239_v13 }
 0x32b   :  { %v1247_v34 = vcombine.low %v1232_v9, %v1241_v62 }
 0x32d   :  { %v1261_v46 = vrot.slane %v1247_v34, %v2170_v21 }
 0x32f   :  { %v1262_v56 = vcombine.low %v1254_v41, %v1261_v46 }
 0x331   :  { %v1269_v6 = vrot.slane %v1262_v56, %v2170_v21 }
 0x333   :  { %1271 = vst.msk [vmem:[%s2300_s10] sm:$0xf] %vm2206_vm12, %v1269_v6 }
 0x3e8   :  { %v1348_v23 = vpop.f32.mrb[32].mxu0 }
 0x3e9   :  { %v1349_v0 = vadd.f32 %v1348_v23, %v1277_v53  ;;  %v1350_v4 = vpop.f32.mrb[33].mxu0 }
 0x3ea   :  { %v1351_v33 = vadd.f32 %v1350_v4, %v1277_v53 }
 0x3ec   :  { %v1428_v31 = vcombine.low %v1349_v0, %v1351_v33 }
 0x3ee   :  { %1432 = vst [vmem:[%s2301_s8] sm:$0xff] %v1428_v31 }
 0x3f2   :  { %v1419_v35 = vpop.f32.mrb[32].mxu1 }
 0x3f3   :  { %v1420_v5 = vadd.f32 %v1419_v35, %v1277_v53  ;;  %v1421_v22 = vpop.f32.mrb[33].mxu1 }
 0x3f4   :  { %v1422_v21 = vadd.f32 %v1421_v22, %v1277_v53 }
 0x3f6   :  { %v1429_v59 = vcombine.low %v1420_v5, %v1422_v21 }
 0x3f8   :  { %1433 = vst [vmem:[%s2301_s8 + $0x8] sm:$0xff] %v1429_v59 }

</bundles_post_ra>
